<compile_context>
chip_gen: v6e
topology: v6e:2x2x1
jax: 0.10.0
libtpu: 0.0.40
codegen_flags: <defaults>
</compile_context>

<pallas_src>
import functools

import jax
import jax.numpy as jnp
from jax import lax
from jax.experimental import pallas as pl
from jax.experimental.pallas import tpu as pltpu


def encoder_kernel(x_ref, wih_ref, whh_ref, b_ref, h0_ref, c0_ref,
                   h_out_ref, c_out_ref, gx_ref, h_s, c_s):
    t_chunk, b_tile, H = x_ref.shape
    ti = pl.program_id(1)

    # First time-chunk for this batch tile: load the initial state.
    @pl.when(ti == 0)
    def _():
        h_s[...] = h0_ref[...]
        c_s[...] = c0_ref[...]

    # Chunk-parallel input projection: (T_CHUNK*B_TILE, H) @ (H, 4H) + bias,
    # bf16 operands, f32 accumulation into the per-chunk VMEM scratch.
    x = x_ref[...].reshape(t_chunk * b_tile, H)
    gx_ref[...] = (jnp.dot(x, wih_ref[...],
                           preferred_element_type=jnp.float32)
                   + b_ref[...])

    whh = whh_ref[...]                      # (H, 4H) bf16, gate order [i,f,o,g]

    def step(t, carry):
        h, c = carry
        off = pl.multiple_of(t * b_tile, b_tile)
        gates = (jnp.dot(h.astype(whh.dtype), whh,
                         preferred_element_type=jnp.float32)
                 + gx_ref[pl.ds(off, b_tile), :])                 # (B_TILE, 4H)
        # Gates permuted to [i, f, o, g] in the wrapper: one sigmoid over a
        # contiguous (B_TILE, 3H) slab and one tanh over the trailing H.
        s = jax.nn.sigmoid(gates[:, :3 * H])
        g = jnp.tanh(gates[:, 3 * H:])
        i_g = s[:, 0 * H:1 * H]
        f_g = s[:, 1 * H:2 * H]
        o_g = s[:, 2 * H:3 * H]
        c_new = f_g * c + i_g * g
        h_new = o_g * jnp.tanh(c_new)
        return h_new, c_new

    # Capped unroll: only the per-chunk steps are unrolled.
    h, c = lax.fori_loop(0, t_chunk, step, (h_s[...], c_s[...]), unroll=True)
    h_s[...] = h
    c_s[...] = c

    # Last time-chunk for this batch tile: emit the final state.
    @pl.when(ti == pl.num_programs(1) - 1)
    def _():
        h_out_ref[...] = h
        c_out_ref[...] = c


def prepare_encoder_params(emb, w_ih, w_hh, b_ih, b_hh):
    """One-time weight prep (NOT in the per-call jit path).

    Permutes PyTorch LSTMCell gate blocks [i, f, g, o] -> [i, f, o, g],
    transposes the weights for right-multiplication, fuses the two biases,
    and casts the matmul operands to bf16.
    """
    H = w_ih.shape[1]
    perm = jnp.concatenate([jnp.arange(0, 2 * H),        # i, f
                            jnp.arange(3 * H, 4 * H),    # o
                            jnp.arange(2 * H, 3 * H)])   # g
    wih_t = w_ih[perm].T.astype(jnp.bfloat16)            # (H, 4H)
    whh_t = w_hh[perm].T.astype(jnp.bfloat16)            # (H, 4H)
    bias = (b_ih + b_hh)[perm].reshape(1, 4 * H).astype(jnp.float32)
    emb_bf16 = emb.astype(jnp.bfloat16)                  # (V, H)
    return emb_bf16, wih_t, whh_t, bias


@functools.partial(jax.jit, static_argnames=("t_chunk", "b_tile"))
def encoder_forward(enc_inputs, h0, c0, emb_bf16, wih_t, whh_t, bias,
                    *, t_chunk=4, b_tile=None):
    seq_len, B = enc_inputs.shape
    H = emb_bf16.shape[1]
    if b_tile is None:
        b_tile = B
    assert seq_len % t_chunk == 0, "t_chunk must divide seq_len"
    assert B % b_tile == 0 and b_tile % 8 == 0, "b_tile must divide B, mult of 8"
    num_b = B // b_tile
    num_t = seq_len // t_chunk

    # Embedding gather hoisted out of the serial kernel (bf16 activations).
    x = emb_bf16[enc_inputs.astype(jnp.int32)]            # (seq, B, H)

    # VMEM budget sized to the chunked buffers (fits default scoped limits on
    # v5e/v6e/v7x; generous 2x slack for double-buffering).
    x_blk = t_chunk * b_tile * H * 2                      # bf16 x chunk
    gx_blk = t_chunk * b_tile * 4 * H * 4                 # f32 gx scratch
    w_blk = 2 * H * 4 * H * 2 + 4 * H * 4                 # bf16 weights + f32 bias
    st_blk = 8 * b_tile * H * 4                           # h0/c0/out/scratch states
    vmem_limit = int(min(max(2 * (2 * x_blk + gx_blk + w_blk + st_blk),
                             1 << 20), 32 << 20))

    cost = pl.CostEstimate(
        flops=4 * seq_len * B * H * 4 * H,                # proj + recurrence matmuls
        transcendentals=seq_len * B * 5 * H,              # 3 sigmoid + 2 tanh / step
        bytes_accessed=(seq_len * B * H * 2               # x
                        + 2 * H * 4 * H * 2 + 4 * H * 4   # weights + bias
                        + 6 * B * H * 4))                 # h0, c0, h, c (in/out)

    grid_spec = pltpu.PrefetchScalarGridSpec(
        num_scalar_prefetch=0,
        grid=(num_b, num_t),
        in_specs=[
            pl.BlockSpec((t_chunk, b_tile, H), lambda bi, ti: (ti, bi, 0)),  # x
            pl.BlockSpec((H, 4 * H), lambda bi, ti: (0, 0)),                 # W_ih^T
            pl.BlockSpec((H, 4 * H), lambda bi, ti: (0, 0)),                 # W_hh^T
            pl.BlockSpec((1, 4 * H), lambda bi, ti: (0, 0)),                 # bias
            pl.BlockSpec((b_tile, H), lambda bi, ti: (bi, 0)),               # h0
            pl.BlockSpec((b_tile, H), lambda bi, ti: (bi, 0)),               # c0
        ],
        out_specs=[
            pl.BlockSpec((b_tile, H), lambda bi, ti: (bi, 0)),               # h_out
            pl.BlockSpec((b_tile, H), lambda bi, ti: (bi, 0)),               # c_out
        ],
        scratch_shapes=[
            pltpu.VMEM((t_chunk * b_tile, 4 * H), jnp.float32),              # gx chunk
            pltpu.VMEM((b_tile, H), jnp.float32),                            # h state
            pltpu.VMEM((b_tile, H), jnp.float32),                            # c state
        ],
    )

    h, c = pl.pallas_call(
        encoder_kernel,
        out_shape=(jax.ShapeDtypeStruct((B, H), jnp.float32),
                   jax.ShapeDtypeStruct((B, H), jnp.float32)),
        grid_spec=grid_spec,
        compiler_params=pltpu.CompilerParams(
            dimension_semantics=("parallel", "arbitrary"),
            vmem_limit_bytes=vmem_limit),
        cost_estimate=cost,
    )(x, wih_t, whh_t, bias, h0, c0)
    return h, c


def encoder_reference(enc_inputs, h0, c0, emb, w_ih, w_hh, b_ih, b_hh):
    """Pure-JAX f32 reference matching nn.Embedding + nn.LSTMCell loop."""
    H = emb.shape[1]
    x_seq = emb[enc_inputs]                   # (seq, B, H)
    h, c = h0, c0
    for t in range(enc_inputs.shape[0]):
        gates = x_seq[t] @ w_ih.T + h @ w_hh.T + b_ih + b_hh
        i_g = jax.nn.sigmoid(gates[:, 0 * H:1 * H])
        f_g = jax.nn.sigmoid(gates[:, 1 * H:2 * H])
        g_g = jnp.tanh(gates[:, 2 * H:3 * H])
        o_g = jax.nn.sigmoid(gates[:, 3 * H:4 * H])
        c = f_g * c + i_g * g_g
        h = o_g * jnp.tanh(c)
    return h, c


if __name__ == "__main__":
    # Small, deterministic shapes (H=128 keeps gate slices / stores lane-dense;
    # B=8 keeps sublane tiles full). For larger B, pass b_tile=B//2 (mult of 8)
    # to shard the recurrence across v7x's two TensorCores.
    seq_len = 16
    batch = 8
    hidden = 128
    vocab = 32
    t_chunk = 4

    key = jax.random.PRNGKey(0)
    k_emb, k_wih, k_whh, k_bih, k_bhh, k_ids, k_h, k_c = jax.random.split(key, 8)

    bound = 1.0 / jnp.sqrt(hidden)
    emb = jax.random.normal(k_emb, (vocab, hidden), jnp.float32)
    w_ih = jax.random.uniform(k_wih, (4 * hidden, hidden), jnp.float32, -bound, bound)
    w_hh = jax.random.uniform(k_whh, (4 * hidden, hidden), jnp.float32, -bound, bound)
    b_ih = jax.random.uniform(k_bih, (4 * hidden,), jnp.float32, -bound, bound)
    b_hh = jax.random.uniform(k_bhh, (4 * hidden,), jnp.float32, -bound, bound)

    enc_inputs = jax.random.randint(k_ids, (seq_len, batch), 0, vocab, jnp.int32)
    h0 = jax.random.normal(k_h, (batch, hidden), jnp.float32)
    c0 = jax.random.normal(k_c, (batch, hidden), jnp.float32)

    # One-time weight prep (permute / transpose / fuse bias / bf16 cast).
    emb_bf16, wih_t, whh_t, bias = prepare_encoder_params(
        emb, w_ih, w_hh, b_ih, b_hh)

    h, c = encoder_forward(enc_inputs, h0, c0, emb_bf16, wih_t, whh_t, bias,
                           t_chunk=t_chunk, b_tile=batch)
    h, c = jax.block_until_ready((h, c))

    h_ref, c_ref = encoder_reference(enc_inputs, h0, c0, emb, w_ih, w_hh,
                                     b_ih, b_hh)
    # bf16 matmul operands (f32 accumulation) vs the pure-f32 reference.
    assert jnp.allclose(h, h_ref, atol=3e-2, rtol=3e-2), \
        float(jnp.max(jnp.abs(h - h_ref)))
    assert jnp.allclose(c, c_ref, atol=3e-2, rtol=3e-2), \
        float(jnp.max(jnp.abs(c - c_ref)))

    print("KERNEL_OK")
</pallas_src>

<mosaic_0001>
module attributes {stable_mosaic.version = 11 : i64} {
  func.func @encoder_kernel(%arg0: i32, %arg1: i32, %arg2: memref<4x8x128xbf16, #tpu.memory_space<vmem>>, %arg3: memref<128x512xbf16, #tpu.memory_space<vmem>>, %arg4: memref<128x512xbf16, #tpu.memory_space<vmem>>, %arg5: memref<1x512xf32, #tpu.memory_space<vmem>>, %arg6: memref<8x128xf32, #tpu.memory_space<vmem>>, %arg7: memref<8x128xf32, #tpu.memory_space<vmem>>, %arg8: memref<8x128xf32, #tpu.memory_space<vmem>>, %arg9: memref<8x128xf32, #tpu.memory_space<vmem>>, %arg10: memref<32x512xf32, #tpu.memory_space<vmem>>, %arg11: memref<8x128xf32, #tpu.memory_space<vmem>>, %arg12: memref<8x128xf32, #tpu.memory_space<vmem>>) attributes {dimension_semantics = [#tpu.dimension_semantics<parallel>, #tpu.dimension_semantics<arbitrary>], iteration_bounds = array<i64: 1, 4>, scalar_prefetch = 0 : i64, scratch_operands = 3 : i64, tpu.core_type = #tpu.core_type<tc>, window_params = [{transform_indices = @transform_0, window_bounds = array<i64: 4, 8, 128>}, {pipeline_mode = #tpu.pipeline_mode<synchronous>, transform_indices = @transform_1, window_bounds = array<i64: 128, 512>}, {pipeline_mode = #tpu.pipeline_mode<synchronous>, transform_indices = @transform_2, window_bounds = array<i64: 128, 512>}, {pipeline_mode = #tpu.pipeline_mode<synchronous>, transform_indices = @transform_3, window_bounds = array<i64: 1, 512>}, {transform_indices = @transform_4, window_bounds = array<i64: 8, 128>}, {transform_indices = @transform_5, window_bounds = array<i64: 8, 128>}, {transform_indices = @transform_6, window_bounds = array<i64: 8, 128>}, {transform_indices = @transform_7, window_bounds = array<i64: 8, 128>}]} {
    %c0_i32 = arith.constant 0 : i32
    %0 = arith.cmpi eq, %arg1, %c0_i32 : i32
    %1 = arith.extui %0 : i1 to i32
    %c0_i32_0 = arith.constant 0 : i32
    %2 = arith.cmpi ne, %1, %c0_i32_0 : i32
    scf.if %2 {
      %c0_37 = arith.constant 0 : index
      %c0_38 = arith.constant 0 : index
      %111 = vector.load %arg6[%c0_37, %c0_38] : memref<8x128xf32, #tpu.memory_space<vmem>>, vector<8x128xf32>
      %c0_39 = arith.constant 0 : index
      %c0_40 = arith.constant 0 : index
      %112 = vector.load %arg11[%c0_39, %c0_40] : memref<8x128xf32, #tpu.memory_space<vmem>>, vector<8x128xf32>
      tpu.vector_store %arg11[%c0_39, %c0_40], %111 {strides = array<i32>} : memref<8x128xf32, #tpu.memory_space<vmem>>, vector<8x128xf32>,
      %c0_41 = arith.constant 0 : index
      %c0_42 = arith.constant 0 : index
      %113 = vector.load %arg7[%c0_41, %c0_42] : memref<8x128xf32, #tpu.memory_space<vmem>>, vector<8x128xf32>
      %c0_43 = arith.constant 0 : index
      %c0_44 = arith.constant 0 : index
      %114 = vector.load %arg12[%c0_43, %c0_44] : memref<8x128xf32, #tpu.memory_space<vmem>>, vector<8x128xf32>
      tpu.vector_store %arg12[%c0_43, %c0_44], %113 {strides = array<i32>} : memref<8x128xf32, #tpu.memory_space<vmem>>, vector<8x128xf32>,
    } else {
    }
    %c0 = arith.constant 0 : index
    %c0_1 = arith.constant 0 : index
    %c0_2 = arith.constant 0 : index
    %3 = vector.load %arg2[%c0, %c0_1, %c0_2] : memref<4x8x128xbf16, #tpu.memory_space<vmem>>, vector<4x8x128xbf16>
    %4 = vector.shape_cast %3 : vector<4x8x128xbf16> to vector<32x128xbf16>
    %c0_3 = arith.constant 0 : index
    %c0_4 = arith.constant 0 : index
    %5 = vector.load %arg3[%c0_3, %c0_4] : memref<128x512xbf16, #tpu.memory_space<vmem>>, vector<128x512xbf16>
    %cst = arith.constant dense<0.000000e+00> : vector<32x512xf32>
    %6 = tpu.matmul %4, %5, %cst {dimension_numbers = #tpu.dot_dimension_numbers<[1], [0], [0], [1], [0, 0, 1, 1], [], []>} : vector<32x128xbf16>, vector<128x512xbf16>, vector<32x512xf32> -> vector<32x512xf32>
    %c0_5 = arith.constant 0 : index
    %c0_6 = arith.constant 0 : index
    %7 = vector.load %arg5[%c0_5, %c0_6] : memref<1x512xf32, #tpu.memory_space<vmem>>, vector<1x512xf32>
    %8 = vector.broadcast %7 : vector<1x512xf32> to vector<32x512xf32>
    %9 = arith.addf %6, %8 : vector<32x512xf32>
    %c0_7 = arith.constant 0 : index
    %c0_8 = arith.constant 0 : index
    %10 = vector.load %arg10[%c0_7, %c0_8] : memref<32x512xf32, #tpu.memory_space<vmem>>, vector<32x512xf32>
    tpu.vector_store %arg10[%c0_7, %c0_8], %9 {strides = array<i32>} : memref<32x512xf32, #tpu.memory_space<vmem>>, vector<32x512xf32>,
    %c0_9 = arith.constant 0 : index
    %c0_10 = arith.constant 0 : index
    %11 = vector.load %arg4[%c0_9, %c0_10] : memref<128x512xbf16, #tpu.memory_space<vmem>>, vector<128x512xbf16>
    %c0_11 = arith.constant 0 : index
    %c0_12 = arith.constant 0 : index
    %12 = vector.load %arg11[%c0_11, %c0_12] : memref<8x128xf32, #tpu.memory_space<vmem>>, vector<8x128xf32>
    %c0_13 = arith.constant 0 : index
    %c0_14 = arith.constant 0 : index
    %13 = vector.load %arg12[%c0_13, %c0_14] : memref<8x128xf32, #tpu.memory_space<vmem>>, vector<8x128xf32>
    %c0_i32_15 = arith.constant 0 : i32
    %c8_i32 = arith.constant 8 : i32
    %14 = arith.muli %c0_i32_15, %c8_i32 : i32
    %15 = tpu.assume_multiple %14, 8 : i32
    %16 = arith.truncf %12 : vector<8x128xf32> to vector<8x128xbf16>
    %cst_16 = arith.constant dense<0.000000e+00> : vector<8x512xf32>
    %17 = tpu.matmul %16, %11, %cst_16 {dimension_numbers = #tpu.dot_dimension_numbers<[1], [0], [0], [1], [0, 0, 1, 1], [], []>} : vector<8x128xbf16>, vector<128x512xbf16>, vector<8x512xf32> -> vector<8x512xf32>
    %18 = arith.index_cast %15 : i32 to index
    %c0_17 = arith.constant 0 : index
    %19 = vector.load %arg10[%18, %c0_17] : memref<32x512xf32, #tpu.memory_space<vmem>>, vector<8x512xf32>
    %20 = arith.addf %17, %19 : vector<8x512xf32>
    %21 = vector.extract_strided_slice %20 {offsets = [0, 0], sizes = [8, 384], strides = [1, 1]} : vector<8x512xf32> to vector<8x384xf32>
    %22 = arith.negf %21 : vector<8x384xf32>
    %23 = math.exp %22 : vector<8x384xf32>
    %cst_18 = arith.constant 1.000000e+00 : f32
    %24 = vector.broadcast %cst_18 : f32 to vector<8x384xf32>
    %25 = arith.addf %24, %23 : vector<8x384xf32>
    %26 = arith.divf %24, %25 : vector<8x384xf32>
    %27 = vector.extract_strided_slice %20 {offsets = [0, 384], sizes = [8, 128], strides = [1, 1]} : vector<8x512xf32> to vector<8x128xf32>
    %28 = math.tanh %27 : vector<8x128xf32>
    %29 = vector.extract_strided_slice %26 {offsets = [0, 0], sizes = [8, 128], strides = [1, 1]} : vector<8x384xf32> to vector<8x128xf32>
    %30 = vector.extract_strided_slice %26 {offsets = [0, 128], sizes = [8, 128], strides = [1, 1]} : vector<8x384xf32> to vector<8x128xf32>
    %31 = vector.extract_strided_slice %26 {offsets = [0, 256], sizes = [8, 128], strides = [1, 1]} : vector<8x384xf32> to vector<8x128xf32>
    %32 = arith.mulf %30, %13 : vector<8x128xf32>
    %33 = arith.mulf %29, %28 : vector<8x128xf32>
    %34 = arith.addf %32, %33 : vector<8x128xf32>
    %35 = math.tanh %34 : vector<8x128xf32>
    %36 = arith.mulf %31, %35 : vector<8x128xf32>
    %c1_i32 = arith.constant 1 : i32
    %c8_i32_19 = arith.constant 8 : i32
    %37 = arith.muli %c1_i32, %c8_i32_19 : i32
    %38 = tpu.assume_multiple %37, 8 : i32
    %39 = arith.truncf %36 : vector<8x128xf32> to vector<8x128xbf16>
    %cst_20 = arith.constant dense<0.000000e+00> : vector<8x512xf32>
    %40 = tpu.matmul %39, %11, %cst_20 {dimension_numbers = #tpu.dot_dimension_numbers<[1], [0], [0], [1], [0, 0, 1, 1], [], []>} : vector<8x128xbf16>, vector<128x512xbf16>, vector<8x512xf32> -> vector<8x512xf32>
    %41 = arith.index_cast %38 : i32 to index
    %c0_21 = arith.constant 0 : index
    %42 = vector.load %arg10[%41, %c0_21] : memref<32x512xf32, #tpu.memory_space<vmem>>, vector<8x512xf32>
    %43 = arith.addf %40, %42 : vector<8x512xf32>
    %44 = vector.extract_strided_slice %43 {offsets = [0, 0], sizes = [8, 384], strides = [1, 1]} : vector<8x512xf32> to vector<8x384xf32>
    %45 = arith.negf %44 : vector<8x384xf32>
    %46 = math.exp %45 : vector<8x384xf32>
    %cst_22 = arith.constant 1.000000e+00 : f32
    %47 = vector.broadcast %cst_22 : f32 to vector<8x384xf32>
    %48 = arith.addf %47, %46 : vector<8x384xf32>
    %49 = arith.divf %47, %48 : vector<8x384xf32>
    %50 = vector.extract_strided_slice %43 {offsets = [0, 384], sizes = [8, 128], strides = [1, 1]} : vector<8x512xf32> to vector<8x128xf32>
    %51 = math.tanh %50 : vector<8x128xf32>
    %52 = vector.extract_strided_slice %49 {offsets = [0, 0], sizes = [8, 128], strides = [1, 1]} : vector<8x384xf32> to vector<8x128xf32>
    %53 = vector.extract_strided_slice %49 {offsets = [0, 128], sizes = [8, 128], strides = [1, 1]} : vector<8x384xf32> to vector<8x128xf32>
    %54 = vector.extract_strided_slice %49 {offsets = [0, 256], sizes = [8, 128], strides = [1, 1]} : vector<8x384xf32> to vector<8x128xf32>
    %55 = arith.mulf %53, %34 : vector<8x128xf32>
    %56 = arith.mulf %52, %51 : vector<8x128xf32>
    %57 = arith.addf %55, %56 : vector<8x128xf32>
    %58 = math.tanh %57 : vector<8x128xf32>
    %59 = arith.mulf %54, %58 : vector<8x128xf32>
    %c2_i32 = arith.constant 2 : i32
    %c8_i32_23 = arith.constant 8 : i32
    %60 = arith.muli %c2_i32, %c8_i32_23 : i32
    %61 = tpu.assume_multiple %60, 8 : i32
    %62 = arith.truncf %59 : vector<8x128xf32> to vector<8x128xbf16>
    %cst_24 = arith.constant dense<0.000000e+00> : vector<8x512xf32>
    %63 = tpu.matmul %62, %11, %cst_24 {dimension_numbers = #tpu.dot_dimension_numbers<[1], [0], [0], [1], [0, 0, 1, 1], [], []>} : vector<8x128xbf16>, vector<128x512xbf16>, vector<8x512xf32> -> vector<8x512xf32>
    %64 = arith.index_cast %61 : i32 to index
    %c0_25 = arith.constant 0 : index
    %65 = vector.load %arg10[%64, %c0_25] : memref<32x512xf32, #tpu.memory_space<vmem>>, vector<8x512xf32>
    %66 = arith.addf %63, %65 : vector<8x512xf32>
    %67 = vector.extract_strided_slice %66 {offsets = [0, 0], sizes = [8, 384], strides = [1, 1]} : vector<8x512xf32> to vector<8x384xf32>
    %68 = arith.negf %67 : vector<8x384xf32>
    %69 = math.exp %68 : vector<8x384xf32>
    %cst_26 = arith.constant 1.000000e+00 : f32
    %70 = vector.broadcast %cst_26 : f32 to vector<8x384xf32>
    %71 = arith.addf %70, %69 : vector<8x384xf32>
    %72 = arith.divf %70, %71 : vector<8x384xf32>
    %73 = vector.extract_strided_slice %66 {offsets = [0, 384], sizes = [8, 128], strides = [1, 1]} : vector<8x512xf32> to vector<8x128xf32>
    %74 = math.tanh %73 : vector<8x128xf32>
    %75 = vector.extract_strided_slice %72 {offsets = [0, 0], sizes = [8, 128], strides = [1, 1]} : vector<8x384xf32> to vector<8x128xf32>
    %76 = vector.extract_strided_slice %72 {offsets = [0, 128], sizes = [8, 128], strides = [1, 1]} : vector<8x384xf32> to vector<8x128xf32>
    %77 = vector.extract_strided_slice %72 {offsets = [0, 256], sizes = [8, 128], strides = [1, 1]} : vector<8x384xf32> to vector<8x128xf32>
    %78 = arith.mulf %76, %57 : vector<8x128xf32>
    %79 = arith.mulf %75, %74 : vector<8x128xf32>
    %80 = arith.addf %78, %79 : vector<8x128xf32>
    %81 = math.tanh %80 : vector<8x128xf32>
    %82 = arith.mulf %77, %81 : vector<8x128xf32>
    %c3_i32 = arith.constant 3 : i32
    %c8_i32_27 = arith.constant 8 : i32
    %83 = arith.muli %c3_i32, %c8_i32_27 : i32
    %84 = tpu.assume_multiple %83, 8 : i32
    %85 = arith.truncf %82 : vector<8x128xf32> to vector<8x128xbf16>
    %cst_28 = arith.constant dense<0.000000e+00> : vector<8x512xf32>
    %86 = tpu.matmul %85, %11, %cst_28 {dimension_numbers = #tpu.dot_dimension_numbers<[1], [0], [0], [1], [0, 0, 1, 1], [], []>} : vector<8x128xbf16>, vector<128x512xbf16>, vector<8x512xf32> -> vector<8x512xf32>
    %87 = arith.index_cast %84 : i32 to index
    %c0_29 = arith.constant 0 : index
    %88 = vector.load %arg10[%87, %c0_29] : memref<32x512xf32, #tpu.memory_space<vmem>>, vector<8x512xf32>
    %89 = arith.addf %86, %88 : vector<8x512xf32>
    %90 = vector.extract_strided_slice %89 {offsets = [0, 0], sizes = [8, 384], strides = [1, 1]} : vector<8x512xf32> to vector<8x384xf32>
    %91 = arith.negf %90 : vector<8x384xf32>
    %92 = math.exp %91 : vector<8x384xf32>
    %cst_30 = arith.constant 1.000000e+00 : f32
    %93 = vector.broadcast %cst_30 : f32 to vector<8x384xf32>
    %94 = arith.addf %93, %92 : vector<8x384xf32>
    %95 = arith.divf %93, %94 : vector<8x384xf32>
    %96 = vector.extract_strided_slice %89 {offsets = [0, 384], sizes = [8, 128], strides = [1, 1]} : vector<8x512xf32> to vector<8x128xf32>
    %97 = math.tanh %96 : vector<8x128xf32>
    %98 = vector.extract_strided_slice %95 {offsets = [0, 0], sizes = [8, 128], strides = [1, 1]} : vector<8x384xf32> to vector<8x128xf32>
    %99 = vector.extract_strided_slice %95 {offsets = [0, 128], sizes = [8, 128], strides = [1, 1]} : vector<8x384xf32> to vector<8x128xf32>
    %100 = vector.extract_strided_slice %95 {offsets = [0, 256], sizes = [8, 128], strides = [1, 1]} : vector<8x384xf32> to vector<8x128xf32>
    %101 = arith.mulf %99, %80 : vector<8x128xf32>
    %102 = arith.mulf %98, %97 : vector<8x128xf32>
    %103 = arith.addf %101, %102 : vector<8x128xf32>
    %104 = math.tanh %103 : vector<8x128xf32>
    %105 = arith.mulf %100, %104 : vector<8x128xf32>
    %c4_i32 = arith.constant 4 : i32
    %c0_31 = arith.constant 0 : index
    %c0_32 = arith.constant 0 : index
    %106 = vector.load %arg11[%c0_31, %c0_32] : memref<8x128xf32, #tpu.memory_space<vmem>>, vector<8x128xf32>
    tpu.vector_store %arg11[%c0_31, %c0_32], %105 {strides = array<i32>} : memref<8x128xf32, #tpu.memory_space<vmem>>, vector<8x128xf32>,
    %c0_33 = arith.constant 0 : index
    %c0_34 = arith.constant 0 : index
    %107 = vector.load %arg12[%c0_33, %c0_34] : memref<8x128xf32, #tpu.memory_space<vmem>>, vector<8x128xf32>
    tpu.vector_store %arg12[%c0_33, %c0_34], %103 {strides = array<i32>} : memref<8x128xf32, #tpu.memory_space<vmem>>, vector<8x128xf32>,
    %c3_i32_35 = arith.constant 3 : i32
    %108 = arith.cmpi eq, %arg1, %c3_i32_35 : i32
    %109 = arith.extui %108 : i1 to i32
    %c0_i32_36 = arith.constant 0 : i32
    %110 = arith.cmpi ne, %109, %c0_i32_36 : i32
    scf.if %110 {
      %c0_37 = arith.constant 0 : index
      %c0_38 = arith.constant 0 : index
      %111 = vector.load %arg8[%c0_37, %c0_38] : memref<8x128xf32, #tpu.memory_space<vmem>>, vector<8x128xf32>
      tpu.vector_store %arg8[%c0_37, %c0_38], %105 {strides = array<i32>} : memref<8x128xf32, #tpu.memory_space<vmem>>, vector<8x128xf32>,
      %c0_39 = arith.constant 0 : index
      %c0_40 = arith.constant 0 : index
      %112 = vector.load %arg9[%c0_39, %c0_40] : memref<8x128xf32, #tpu.memory_space<vmem>>, vector<8x128xf32>
      tpu.vector_store %arg9[%c0_39, %c0_40], %103 {strides = array<i32>} : memref<8x128xf32, #tpu.memory_space<vmem>>, vector<8x128xf32>,
    } else {
    }
    return
  }
  func.func @transform_0(%arg0: i32, %arg1: i32) -> (i32, i32, i32) {
    %c0_i32 = arith.constant 0 : i32
    %c0_i32_0 = arith.constant 0 : i32
    return %arg1, %arg0, %c0_i32 : i32, i32, i32
  }
  func.func @transform_1(%arg0: i32, %arg1: i32) -> (i32, i32) {
    %c0_i32 = arith.constant 0 : i32
    %c0_i32_0 = arith.constant 0 : i32
    %c0_i32_1 = arith.constant 0 : i32
    return %c0_i32, %c0_i32_0 : i32, i32
  }
  func.func @transform_2(%arg0: i32, %arg1: i32) -> (i32, i32) {
    %c0_i32 = arith.constant 0 : i32
    %c0_i32_0 = arith.constant 0 : i32
    %c0_i32_1 = arith.constant 0 : i32
    return %c0_i32, %c0_i32_0 : i32, i32
  }
  func.func @transform_3(%arg0: i32, %arg1: i32) -> (i32, i32) {
    %c0_i32 = arith.constant 0 : i32
    %c0_i32_0 = arith.constant 0 : i32
    %c0_i32_1 = arith.constant 0 : i32
    return %c0_i32, %c0_i32_0 : i32, i32
  }
  func.func @transform_4(%arg0: i32, %arg1: i32) -> (i32, i32) {
    %c0_i32 = arith.constant 0 : i32
    %c0_i32_0 = arith.constant 0 : i32
    return %arg0, %c0_i32 : i32, i32
  }
  func.func @transform_5(%arg0: i32, %arg1: i32) -> (i32, i32) {
    %c0_i32 = arith.constant 0 : i32
    %c0_i32_0 = arith.constant 0 : i32
    return %arg0, %c0_i32 : i32, i32
  }
  func.func @transform_6(%arg0: i32, %arg1: i32) -> (i32, i32) {
    %c0_i32 = arith.constant 0 : i32
    %c0_i32_0 = arith.constant 0 : i32
    return %arg0, %c0_i32 : i32, i32
  }
  func.func @transform_7(%arg0: i32, %arg1: i32) -> (i32, i32) {
    %c0_i32 = arith.constant 0 : i32
    %c0_i32_0 = arith.constant 0 : i32
    return %arg0, %c0_i32 : i32, i32
  }
}

</mosaic_0001>

<bundles_post_ra>
// kernel: encoder_forward.1
= control target key start
LH: loop header
LB: loop body
LE: loop exit
PB: predicated region body
PF: predicated region fallthrough
CT: control target
= control target key end

     0   :  { %13 = vsyncpa [#allocation6], 0  ;;  %s2408_s0 = inlined_call_operand.vmem [shape: bf16[16,8,128], index: 0, kind: input, shape index: {}]   ;;  %s2409_s1 = inlined_call_operand.vmem [shape: bf16[128,512], index: 1, kind: input, shape index: {}]   ;;  %s2410_s2 = inlined_call_operand.vmem [shape: bf16[128,512], index: 2, kind: input, shape index: {}]   ;;  %s2411_s3 = inlined_call_operand.vmem [shape: f32[1,512], index: 3, kind: input, shape index: {}]   ;;  %s2412_s4 = inlined_call_operand.vmem [shape: f32[8,128], index: 4, kind: input, shape index: {}]   ;;  %s2413_s5 = inlined_call_operand.vmem [shape: f32[8,128], index: 5, kind: input, shape index: {}]   ;;  %s2414_s6 = inlined_call_operand.hbm [shape: f32[8,128], index: 6, kind: output, shape index: {0}]   ;;  %s2415_s7 = inlined_call_operand.hbm [shape: f32[8,128], index: 7, kind: output, shape index: {1}]  }
   0x1   :  { %14 = vsyncpa [#allocation8], 0  ;;  %s1891_s24 = smov 0   ;;  %s1893_s25 = smov 0  }
   0x2   :  { %s1895_s26 = smov 0  }
   0x3 LB: > { %s1473_s27 = sadd.s32 4294967295, %s1846_s26   ;;  %s29_s28 = sadd.s32 1, %s1842_s25  ;;  %s1846_s26 = sphi %s1895_s26, %s20_s26   ;;  %s1842_s25 = sphi %s1893_s25, %s2435_s25   ;;  %s1838_s24 = sphi %s1891_s24, %s2434_s24  }
   0x4   : > { %p30_p0 = scmp.ge.s32.totalorder %s29_s28, 4  ;;  %p1478_p1 = scmp.ge.s32.totalorder %s1846_s26, 1 }
   0x5   : > { %p278_p2 = scmp.lt.s32.totalorder %s1846_s26, 5 }
   0x6   : > { %s2437_s28 = smov (%p30_p0, %s29_s28), 0 }
   0x7   : > { %p279_p3 = pnand %p1478_p1, %p278_p2 }
   0x9   : > { %282 = sbr.rel (%p279_p3) target bundleno = 1122 (0x462), region = 44 }
   0xe   : > { %s1479_s29 = sshll.u32 %s1838_s24, 2  ;;  %p1481_p5 = scmp.ne.s32.totalorder %s1838_s24, 0 }
   0xf   : > { %p317_p4 = scmp.lt.s32.totalorder %s1479_s29, 15 }
  0x10   : > { %337 = sbr.rel (%p1481_p5) target bundleno = 24 (0x18), region = 48 }
  0x11   : > { %s2439_s29 = smov (!%p317_p4, %s1479_s29), 15 }
  0x12   : > { %s1480_s30 = sshll.u32 %s2439_s29, 2 }
  0x13   : > { %s1916_s10 = scalar_lea.vmem %s2408_s0, %s1480_s30 }
  0x15   : > { %v338_v0 = vld [vmem:[%s2412_s4] sm:$0xff] }
  0x16   : > { %v340_v1 = vld [vmem:[%s2413_s5] sm:$0xff]  ;;  %339 = vst [vmem:[#allocation3] sm:$0xff] %v338_v0 }
  0x17   : > { %341 = vst [vmem:[#allocation4] sm:$0xff] %v340_v1 }
  0x18 PF: > { %v1606_v2 = vld [vmem:[%s2409_s1 + $0xe4] ss:$16 sps:$4 sm:$0xff]   ;;  %v1608_v3 = vld [vmem:[%s2409_s1 + $0xec] ss:$16 sps:$4 sm:$0xff]   ;;  %v2416_v4 = vmov 0   ;;  %p1560_p6 = scmp.ne.s32.totalorder %s1838_s24, 3 }
  0x19   : > { %604 = vmatprep.mubr.bf16.mxu0 %v2416_v4  ;;  %657 = vmatprep.mubr.bf16.mxu1 %v2416_v4  ;;  %v1610_v5 = vld [vmem:[%s2409_s1 + $0xe0] ss:$16 sps:$4 sm:$0xff]   ;;  %v1611_v6 = vld [vmem:[%s2409_s1 + $0xe8] ss:$16 sps:$4 sm:$0xff]   ;;  %v1612_v7 = vld [vmem:[%s2409_s1 + $0xc4] ss:$16 sps:$4 sm:$0xff]  }
  0x1a   : > { %572 = vmatprep.subr.bf16.mxu0 %v1606_v2  ;;  %625 = vmatprep.subr.bf16.mxu1 %v1608_v3  ;;  %v1614_v8 = vld [vmem:[%s2409_s1 + $0xcc] ss:$16 sps:$4 sm:$0xff]   ;;  %v1616_v9 = vld [vmem:[%s2409_s1 + $0xc0] ss:$16 sps:$4 sm:$0xff]   ;;  %v1617_v10 = vld [vmem:[%s2409_s1 + $0xc8] ss:$16 sps:$4 sm:$0xff]  }
  0x1b   : > { %573 = vmatpush1.bf16.msra.mxu0 %v1610_v5  ;;  %626 = vmatpush1.bf16.msra.mxu1 %v1611_v6  ;;  %v1618_v11 = vld [vmem:[%s2409_s1 + $0xa4] ss:$16 sps:$4 sm:$0xff]   ;;  %v1620_v12 = vld [vmem:[%s2409_s1 + $0xac] ss:$16 sps:$4 sm:$0xff]   ;;  %v1622_v13 = vld [vmem:[%s2409_s1 + $0xa0] ss:$16 sps:$4 sm:$0xff]  }
  0x1c   : > { %574 = vmatprep.subr.bf16.mxu0 %v1612_v7  ;;  %627 = vmatprep.subr.bf16.mxu1 %v1614_v8  ;;  %v1623_v14 = vld [vmem:[%s2409_s1 + $0xa8] ss:$16 sps:$4 sm:$0xff]   ;;  %v1624_v15 = vld [vmem:[%s2409_s1 + $0x84] ss:$16 sps:$4 sm:$0xff]   ;;  %v1626_v16 = vld [vmem:[%s2409_s1 + $0x8c] ss:$16 sps:$4 sm:$0xff]   ;;  %v380_v8 = vlaneseq }
  0x1d   : > { %v1628_v17 = vld [vmem:[%s2409_s1 + $0x80] ss:$16 sps:$4 sm:$0xff]   ;;  %v1629_v18 = vld [vmem:[%s2409_s1 + $0x88] ss:$16 sps:$4 sm:$0xff]   ;;  %v1630_v19 = vld [vmem:[%s2409_s1 + $0x64] ss:$16 sps:$4 sm:$0xff]  }
  0x1e   : > { %v1632_v20 = vld [vmem:[%s2409_s1 + $0x6c] ss:$16 sps:$4 sm:$0xff]   ;;  %v1634_v21 = vld [vmem:[%s2409_s1 + $0x60] ss:$16 sps:$4 sm:$0xff]   ;;  %v1635_v22 = vld [vmem:[%s2409_s1 + $0x68] ss:$16 sps:$4 sm:$0xff]  }
  0x1f   : > { %575 = vmatpush1.bf16.msra.mxu0 %v1616_v9  ;;  %628 = vmatpush1.bf16.msra.mxu1 %v1617_v10  ;;  %v1636_v23 = vld [vmem:[%s2409_s1 + $0x44] ss:$16 sps:$4 sm:$0xff]   ;;  %v1638_v24 = vld [vmem:[%s2409_s1 + $0x4c] ss:$16 sps:$4 sm:$0xff]   ;;  %v1640_v25 = vld [vmem:[%s2409_s1 + $0x40] ss:$16 sps:$4 sm:$0xff]  }
  0x20   : > { %576 = vmatprep.subr.bf16.mxu0 %v1618_v11  ;;  %629 = vmatprep.subr.bf16.mxu1 %v1620_v12  ;;  %v1641_v26 = vld [vmem:[%s2409_s1 + $0x48] ss:$16 sps:$4 sm:$0xff]   ;;  %v1642_v27 = vld [vmem:[%s2409_s1 + $0x24] ss:$16 sps:$4 sm:$0xff]   ;;  %v1644_v28 = vld [vmem:[%s2409_s1 + $0x2c] ss:$16 sps:$4 sm:$0xff]  }
  0x21   : > { %v1646_v29 = vld [vmem:[%s2409_s1 + $0x20] ss:$16 sps:$4 sm:$0xff]   ;;  %v1647_v30 = vld [vmem:[%s2409_s1 + $0x28] ss:$16 sps:$4 sm:$0xff]   ;;  %v1648_v31 = vld [vmem:[%s2409_s1 + $0x4] ss:$16 sps:$4 sm:$0xff]  }
  0x22   : > { %v1650_v32 = vld [vmem:[%s2409_s1 + $0xc] ss:$16 sps:$4 sm:$0xff]   ;;  %v1652_v33 = vld [vmem:[%s2409_s1] ss:$16 sps:$4 sm:$0xff]   ;;  %v1653_v34 = vld [vmem:[%s2409_s1 + $0x8] ss:$16 sps:$4 sm:$0xff]  }
  0x23   : > { %577 = vmatpush1.bf16.msra.mxu0 %v1622_v13  ;;  %630 = vmatpush1.bf16.msra.mxu1 %v1623_v14  ;;  %v2026_v35 = vld [vmem:[%s2410_s2 + $0xe4] ss:$16 sps:$4 sm:$0xff]   ;;  %v2031_v36 = vld [vmem:[%s2410_s2 + $0xec] ss:$16 sps:$4 sm:$0xff]   ;;  %v2037_v38 = vld [vmem:[%s2410_s2 + $0xe0] ss:$16 sps:$4 sm:$0xff]  }
  0x24   : > { %578 = vmatprep.subr.bf16.mxu0 %v1624_v15  ;;  %631 = vmatprep.subr.bf16.mxu1 %v1626_v16  ;;  %v1654_v37 = vld [vmem:[%s1916_s10] sm:$0xff]   ;;  %v2042_v39 = vld [vmem:[%s2410_s2 + $0xe8] ss:$16 sps:$4 sm:$0xff]   ;;  %v2054_v41 = vld [vmem:[%s2410_s2 + $0xcc] ss:$16 sps:$4 sm:$0xff]   ;;  %v381_v9 = vshrl.u32 %v380_v8, 7 }
  0x25   : > { %v2047_v40 = vld [vmem:[%s2410_s2 + $0xc4] ss:$16 sps:$4 sm:$0xff]   ;;  %v2059_v42 = vld [vmem:[%s2410_s2 + $0xc0] ss:$16 sps:$4 sm:$0xff]   ;;  %v2064_v43 = vld [vmem:[%s2410_s2 + $0xc8] ss:$16 sps:$4 sm:$0xff]  }
  0x26   : > { %v2071_v44 = vld [vmem:[%s2410_s2 + $0xa4] ss:$16 sps:$4 sm:$0xff]   ;;  %v2078_v45 = vld [vmem:[%s2410_s2 + $0xac] ss:$16 sps:$4 sm:$0xff]   ;;  %v2083_v46 = vld [vmem:[%s2410_s2 + $0xa0] ss:$16 sps:$4 sm:$0xff]  }
  0x27   : > { %579 = vmatpush1.bf16.msra.mxu0 %v1628_v17  ;;  %632 = vmatpush1.bf16.msra.mxu1 %v1629_v18  ;;  %v1685_v47 = vld [vmem:[%s1916_s10 + $0x8] sm:$0xff]   ;;  %v2100_v49 = vld [vmem:[%s2410_s2 + $0x84] ss:$16 sps:$4 sm:$0xff]   ;;  %v2112_v51 = vld [vmem:[%s2410_s2 + $0x80] ss:$16 sps:$4 sm:$0xff]   ;;  %v390_v10 = vsub.s32 2, %v381_v9 }
  0x28   : > { %580 = vmatprep.subr.bf16.mxu0 %v1630_v19  ;;  %633 = vmatprep.subr.bf16.mxu1 %v1632_v20  ;;  %v2093_v48 = vld [vmem:[%s2410_s2 + $0xa8] ss:$16 sps:$4 sm:$0xff]   ;;  %v2105_v50 = vld [vmem:[%s2410_s2 + $0x8c] ss:$16 sps:$4 sm:$0xff]   ;;  %v2124_v53 = vld [vmem:[%s2410_s2 + $0x64] ss:$16 sps:$4 sm:$0xff]  }
  0x29   : > { %v2117_v52 = vld [vmem:[%s2410_s2 + $0x88] ss:$16 sps:$4 sm:$0xff]   ;;  %v2129_v54 = vld [vmem:[%s2410_s2 + $0x6c] ss:$16 sps:$4 sm:$0xff]   ;;  %v2138_v55 = vld [vmem:[%s2410_s2 + $0x60] ss:$16 sps:$4 sm:$0xff]  }
  0x2a   : > { %v2143_v56 = vld [vmem:[%s2410_s2 + $0x68] ss:$16 sps:$4 sm:$0xff]   ;;  %v2150_v57 = vld [vmem:[%s2410_s2 + $0x44] ss:$16 sps:$4 sm:$0xff]   ;;  %v2155_v58 = vld [vmem:[%s2410_s2 + $0x4c] ss:$16 sps:$4 sm:$0xff]  }
  0x2b   : > { %581 = vmatpush1.bf16.msra.mxu0 %v1634_v21  ;;  %634 = vmatpush1.bf16.msra.mxu1 %v1635_v22  ;;  %v2162_v59 = vld [vmem:[%s2410_s2 + $0x40] ss:$16 sps:$4 sm:$0xff]   ;;  %v2167_v60 = vld [vmem:[%s2410_s2 + $0x48] ss:$16 sps:$4 sm:$0xff]   ;;  %v2174_v61 = vld [vmem:[%s2410_s2 + $0x24] ss:$16 sps:$4 sm:$0xff]  }
  0x2c   : > { %582 = vmatprep.subr.bf16.mxu0 %v1636_v23  ;;  %635 = vmatprep.subr.bf16.mxu1 %v1638_v24  ;;  %v2179_v62 = vld [vmem:[%s2410_s2 + $0x2c] ss:$16 sps:$4 sm:$0xff]   ;;  %v2186_v63 = vld [vmem:[%s2410_s2 + $0x20] ss:$16 sps:$4 sm:$0xff]   ;;  %v2191_v0 = vld [vmem:[%s2410_s2 + $0x28] ss:$16 sps:$4 sm:$0xff]  }
  0x2d   : > { %v2198_v1 = vld [vmem:[%s2410_s2 + $0x4] ss:$16 sps:$4 sm:$0xff]   ;;  %v2203_v2 = vld [vmem:[%s2410_s2 + $0xc] ss:$16 sps:$4 sm:$0xff]   ;;  %v2210_v3 = vld [vmem:[%s2410_s2] ss:$16 sps:$4 sm:$0xff]  }
  0x2e   : > { %v2215_v5 = vld [vmem:[%s2410_s2 + $0x8] ss:$16 sps:$4 sm:$0xff]   ;;  %v726_v6 = vld [vmem:[#allocation3] sm:$0xff]  ;;  %v382_v11 = vsub.s32 0, %v381_v9  ;;  %v394_v12 = vsub.s32 3, %v381_v9  ;;  %v386_v16 = vsub.s32 1, %v381_v9 }
  0x2f   : > { %583 = vmatpush1.bf16.msra.mxu0 %v1640_v25  ;;  %636 = vmatpush1.bf16.msra.mxu1 %v1641_v26  ;;  %v728_v7 = vpack.c.bf16 %v726_v6, %v726_v6  ;;  %v378_v13 = vld [vmem:[%s2411_s3] sm:$0xf] }
  0x30   : > { %584 = vmatprep.subr.bf16.mxu0 %v1642_v27  ;;  %637 = vmatprep.subr.bf16.mxu1 %v1644_v28  ;;  %v391_v17 = vrot.slane %v378_v13, %v390_v10  ;;  %v383_v20 = vrot.slane %v378_v13, %v382_v11  ;;  %v395_v21 = vrot.slane %v378_v13, %v394_v12 }
  0x31   : > { %v387_v24 = vrot.slane %v378_v13, %v386_v16 }
  0x33   : > { %585 = vmatpush1.bf16.msra.mxu0 %v1646_v29  ;;  %638 = vmatpush1.bf16.msra.mxu1 %v1647_v30 }
  0x34   : > { %586 = vmatprep.subr.bf16.mxu0 %v1648_v31  ;;  %639 = vmatprep.subr.bf16.mxu1 %v1650_v32 }
  0x37   : > { %587 = vmatpush1.bf16.msra.mxu0 %v1652_v33  ;;  %640 = vmatpush1.bf16.msra.mxu1 %v1653_v34 }
  0x38   : > { %896 = vmatprep.subr.bf16.mxu0 %v2026_v35  ;;  %937 = vmatprep.subr.bf16.mxu1 %v2031_v36 }
  0x3a   : > { %605 = vmatmul.mubr.bf16.vlgmr.msra.gmra.mxu0 %v1654_v37  ;;  %658 = vmatmul.mubr.bf16.vlgmr.msra.gmra.mxu1 %v1654_v37 }
  0x3b   : > { %897 = vmatpush1.bf16.msra.mxu0 %v2037_v38  ;;  %938 = vmatpush1.bf16.msra.mxu1 %v2042_v39 }
  0x3c   : > { %898 = vmatprep.subr.bf16.mxu0 %v2047_v40  ;;  %939 = vmatprep.subr.bf16.mxu1 %v2054_v41 }
  0x3d   : > { %614 = vmatprep.mubr.bf16.mxu0 %v2416_v4  ;;  %667 = vmatprep.mubr.bf16.mxu1 %v2416_v4 }
  0x3f   : > { %899 = vmatpush1.bf16.msra.mxu0 %v2059_v42  ;;  %940 = vmatpush1.bf16.msra.mxu1 %v2064_v43 }
  0x40   : > { %900 = vmatprep.subr.bf16.mxu0 %v2071_v44  ;;  %941 = vmatprep.subr.bf16.mxu1 %v2078_v45 }
  0x42   : > { %615 = vmatmul.mubr.bf16.gmra.mxu0 %v1685_v47  ;;  %668 = vmatmul.mubr.bf16.gmra.mxu1 %v1685_v47 }
  0x43   : > { %901 = vmatpush1.bf16.msra.mxu0 %v2083_v46  ;;  %942 = vmatpush1.bf16.msra.mxu1 %v2093_v48 }
  0x44   : > { %902 = vmatprep.subr.bf16.mxu0 %v2100_v49  ;;  %943 = vmatprep.subr.bf16.mxu1 %v2105_v50 }
  0x45   : > { %928 = vmatprep.mubr.bf16.mxu0 %v2416_v4  ;;  %969 = vmatprep.mubr.bf16.mxu1 %v2416_v4 }
  0x47   : > { %903 = vmatpush1.bf16.msra.mxu0 %v2112_v51  ;;  %944 = vmatpush1.bf16.msra.mxu1 %v2117_v52 }
  0x48   : > { %904 = vmatprep.subr.bf16.mxu0 %v2124_v53  ;;  %945 = vmatprep.subr.bf16.mxu1 %v2129_v54 }
  0x4b   : > { %905 = vmatpush1.bf16.msra.mxu0 %v2138_v55  ;;  %946 = vmatpush1.bf16.msra.mxu1 %v2143_v56 }
  0x4c   : > { %906 = vmatprep.subr.bf16.mxu0 %v2150_v57  ;;  %947 = vmatprep.subr.bf16.mxu1 %v2155_v58 }
  0x4f   : > { %907 = vmatpush1.bf16.msra.mxu0 %v2162_v59  ;;  %948 = vmatpush1.bf16.msra.mxu1 %v2167_v60 }
  0x50   : > { %908 = vmatprep.subr.bf16.mxu0 %v2174_v61  ;;  %949 = vmatprep.subr.bf16.mxu1 %v2179_v62 }
  0x53   : > { %909 = vmatpush1.bf16.msra.mxu0 %v2186_v63  ;;  %950 = vmatpush1.bf16.msra.mxu1 %v2191_v0 }
  0x54   : > { %910 = vmatprep.subr.bf16.mxu0 %v2198_v1  ;;  %951 = vmatprep.subr.bf16.mxu1 %v2203_v2 }
  0x57   : > { %911 = vmatpush1.bf16.msra.mxu0 %v2210_v3  ;;  %952 = vmatpush1.bf16.msra.mxu1 %v2215_v5 }
  0x58   : > { %1010 = vmatprep.subr.bf16.mxu0 %v2026_v35  ;;  %1051 = vmatprep.subr.bf16.mxu1 %v2031_v36 }
  0x5a   : > { %929 = vmatmul.mubr.bf16.vlgmr.msra.gmra.mxu0 %v728_v7  ;;  %970 = vmatmul.mubr.bf16.vlgmr.msra.gmra.mxu1 %v728_v7 }
  0x5b   : > { %1011 = vmatpush1.bf16.msra.mxu0 %v2037_v38  ;;  %1052 = vmatpush1.bf16.msra.mxu1 %v2042_v39 }
  0x5c   : > { %1012 = vmatprep.subr.bf16.mxu0 %v2047_v40  ;;  %1053 = vmatprep.subr.bf16.mxu1 %v2054_v41 }
  0x5d   : > { %1042 = vmatprep.mubr.bf16.mxu0 %v2416_v4  ;;  %1083 = vmatprep.mubr.bf16.mxu1 %v2416_v4 }
  0x5f   : > { %1013 = vmatpush1.bf16.msra.mxu0 %v2059_v42  ;;  %1054 = vmatpush1.bf16.msra.mxu1 %v2064_v43 }
  0x60   : > { %1014 = vmatprep.subr.bf16.mxu0 %v2071_v44  ;;  %1055 = vmatprep.subr.bf16.mxu1 %v2078_v45 }
  0x63   : > { %1015 = vmatpush1.bf16.msra.mxu0 %v2083_v46  ;;  %1056 = vmatpush1.bf16.msra.mxu1 %v2093_v48 }
  0x64   : > { %1016 = vmatprep.subr.bf16.mxu0 %v2100_v49  ;;  %1057 = vmatprep.subr.bf16.mxu1 %v2105_v50 }
  0x67   : > { %1017 = vmatpush1.bf16.msra.mxu0 %v2112_v51  ;;  %1058 = vmatpush1.bf16.msra.mxu1 %v2117_v52 }
  0x68   : > { %1018 = vmatprep.subr.bf16.mxu0 %v2124_v53  ;;  %1059 = vmatprep.subr.bf16.mxu1 %v2129_v54 }
  0x6b   : > { %1019 = vmatpush1.bf16.msra.mxu0 %v2138_v55  ;;  %1060 = vmatpush1.bf16.msra.mxu1 %v2143_v56 }
  0x6c   : > { %1020 = vmatprep.subr.bf16.mxu0 %v2150_v57  ;;  %1061 = vmatprep.subr.bf16.mxu1 %v2155_v58 }
  0x6f   : > { %1021 = vmatpush1.bf16.msra.mxu0 %v2162_v59  ;;  %1062 = vmatpush1.bf16.msra.mxu1 %v2167_v60 }
  0x70   : > { %1022 = vmatprep.subr.bf16.mxu0 %v2174_v61  ;;  %1063 = vmatprep.subr.bf16.mxu1 %v2179_v62 }
  0x73   : > { %1023 = vmatpush1.bf16.msra.mxu0 %v2186_v63  ;;  %1064 = vmatpush1.bf16.msra.mxu1 %v2191_v0 }
  0x74   : > { %1024 = vmatprep.subr.bf16.mxu0 %v2198_v1  ;;  %1065 = vmatprep.subr.bf16.mxu1 %v2203_v2 }
  0x77   : > { %1025 = vmatpush1.bf16.msra.mxu0 %v2210_v3  ;;  %1066 = vmatpush1.bf16.msra.mxu1 %v2215_v5 }
  0x78   : > { %1124 = vmatprep.subr.bf16.mxu0 %v2026_v35  ;;  %1165 = vmatprep.subr.bf16.mxu1 %v2031_v36 }
  0xfa   : > { %v606_v14 = vpop.f32.mrf.mxu0  ;;  %v659_v15 = vpop.f32.mrf.mxu1 }
  0xfc   : > { %v608_v18 = vpop.f32.mrf.mxu0  ;;  %v661_v19 = vpop.f32.mrf.mxu1 }
  0xfe   : > { %v610_v22 = vpop.f32.mrf.mxu0  ;;  %v663_v23 = vpop.f32.mrf.mxu1 }
  0xff   : > { %v2260_v25 = vadd.f32 %v610_v22, %v383_v20  ;;  %v2262_v26 = vadd.f32 %v663_v23, %v391_v17  ;;  %v607_v23 = vadd.f32 %v606_v14, %v383_v20 }
 0x100   : > { %v612_v27 = vpop.f32.mrf.mxu0  ;;  %v665_v28 = vpop.f32.mrf.mxu1 }
 0x101   : > { %v2264_v29 = vadd.f32 %v612_v27, %v387_v24  ;;  %v2266_v30 = vadd.f32 %v665_v28, %v395_v21 }
 0x102   : > { %v616_v31 = vpop.f32.mrf.mxu0  ;;  %v669_v32 = vpop.f32.mrf.mxu1 }
 0x103   : > { %v2268_v33 = vadd.f32 %v616_v31, %v383_v20  ;;  %v2270_v34 = vadd.f32 %v669_v32, %v391_v17  ;;  %v609_v31 = vadd.f32 %v608_v18, %v387_v24 }
 0x104   : > { %v618_v37 = vpop.f32.mrf.mxu0  ;;  %v671_v47 = vpop.f32.mrf.mxu1 }
 0x105   : > { %2418 = vst [vmem:[#allocation11_spill] sm:$0xff] %v2270_v34  ;;  %v2272_v6 = vadd.f32 %v618_v37, %v387_v24  ;;  %v2274_v7 = vadd.f32 %v671_v47, %v395_v21 }
 0x106   : > { %v620_v8 = vpop.f32.mrf.mxu0  ;;  %v673_v9 = vpop.f32.mrf.mxu1 }
 0x107   : > { %2419 = vst [vmem:[#allocation12_spill] sm:$0xff] %v2272_v6  ;;  %2420 = vst [vmem:[#allocation13_spill] sm:$0xff] %v2274_v7  ;;  %v2276_v10 = vadd.f32 %v620_v8, %v383_v20  ;;  %v2278_v11 = vadd.f32 %v673_v9, %v391_v17 }
 0x108   : > { %v622_v12 = vpop.f32.mrf.mxu0  ;;  %v675_v13 = vpop.f32.mrf.mxu1 }
 0x109   : > { %2421 = vst [vmem:[#allocation14_spill] sm:$0xff] %v2276_v10  ;;  %2422 = vst [vmem:[#allocation15_spill] sm:$0xff] %v2278_v11  ;;  %v2280_v16 = vadd.f32 %v622_v12, %v387_v24  ;;  %v2282_v22 = vadd.f32 %v675_v13, %v395_v21  ;;  %v660_v12 = vadd.f32 %v659_v15, %v391_v17 }
 0x10a   : > { %v662_v13 = vadd.f32 %v661_v19, %v395_v21 }
 0x10b   : > { %2423 = vst [vmem:[#allocation16_spill] sm:$0xff] %v2280_v16  ;;  %2424 = vst [vmem:[#allocation17_spill] sm:$0xff] %v2282_v22 }
 0x11a   : > { %v930_v27 = vpop.f32.mrf.mxu0  ;;  %v971_v28 = vpop.f32.mrf.mxu1 }
 0x11b   : > { %v931_v32 = vadd.f32 %v930_v27, %v607_v23  ;;  %v972_v16 = vadd.f32 %v971_v28, %v660_v12 }
 0x11c   : > { %v932_v37 = vpop.f32.mrf.mxu0  ;;  %v973_v47 = vpop.f32.mrf.mxu1 }
 0x11d   : > { %v1548_v4 = vmul.f32 -1.442695, %v931_v32  ;;  %v933_v7 = vadd.f32 %v932_v37, %v609_v31  ;;  %v1550_v22 = vmul.f32 -1.442695, %v972_v16  ;;  %v974_v20 = vadd.f32 %v973_v47, %v662_v13 }
 0x11e   : > { %v934_v34 = vpop.f32.mrf.mxu0  ;;  %v975_v8 = vpop.f32.mrf.mxu1 }
 0x11f   : > { %1704 = vpow2.f32 %v1548_v4  ;;  %v1549_v9 = vmul.f32 -1.442695, %v933_v7  ;;  %v727_v4 = vld [vmem:[#allocation4] sm:$0xff] }
 0x120   : > { %v935_v11 = vpop.f32.mrf.mxu0  ;;  %v976_v10 = vpop.f32.mrf.mxu1 }
 0x121   : > { %1706 = vpow2.f32 %v1549_v9 }
 0x122   : > { %1708 = vpow2.f32 %v1550_v22  ;;  %v2425_v22 = vmov 0  }
 0x12c   : > { %v1705_v14 = vpop.eup %1704 }
 0x12d   : > { %v987_v6 = vadd.f32 1.0, %v1705_v14 }
 0x12e   : > { %v1707_v18 = vpop.eup %1706 }
 0x12f   : > { %1710 = vrcp.f32 %v987_v6  ;;  %v988_v24 = vadd.f32 1.0, %v1707_v18  ;;  %v1709_v34 = vpop.eup %1708 }
 0x130   : > { %1712 = vtanh.f32 %v974_v20  ;;  %v989_v10 = vadd.f32 1.0, %v1709_v34 }
 0x131   : > { %1714 = vrcp.f32 %v988_v24 }
 0x132   : > { %1716 = vrcp.f32 %v989_v10 }
 0x13c   : > { %v1711_v23 = vpop.eup %1710 }
 0x13d   : > { %v1713_v7 = vpop.eup %1712 }
 0x13e   : > { %v1715_v11 = vpop.eup %1714  ;;  %v998_v15 = vmul.f32 %v1713_v7, %v1711_v23 }
 0x13f   : > { %v997_v27 = vmul.f32 %v1715_v11, %v727_v4  ;;  %v1717_v19 = vpop.eup %1716 }
 0x141   : > { %v2284_v17 = vadd.f32 %v998_v15, %v997_v27 }
 0x143   : > { %1718 = vtanh.f32 %v2284_v17 }
 0x150   : > { %v1719_v21 = vpop.eup %1718 }
 0x151   : > { %v1001_v16 = vmul.f32 %v1719_v21, %v1717_v19 }
 0x153   : > { %v1002_v6 = vpack.c.bf16 %v1001_v16, %v1001_v16 }
 0x155   : > { %1043 = vmatmul.mubr.bf16.vlgmr.msra.gmra.mxu0 %v1002_v6  ;;  %1084 = vmatmul.mubr.bf16.vlgmr.msra.gmra.mxu1 %v1002_v6 }
 0x156   : > { %1125 = vmatpush1.bf16.msra.mxu0 %v2037_v38  ;;  %1166 = vmatpush1.bf16.msra.mxu1 %v2042_v39 }
 0x157   : > { %1126 = vmatprep.subr.bf16.mxu0 %v2047_v40  ;;  %1167 = vmatprep.subr.bf16.mxu1 %v2054_v41 }
 0x158   : > { %1156 = vmatprep.mubr.bf16.mxu0 %v2425_v22  ;;  %1197 = vmatprep.mubr.bf16.mxu1 %v2425_v22 }
 0x15a   : > { %1127 = vmatpush1.bf16.msra.mxu0 %v2059_v42  ;;  %1168 = vmatpush1.bf16.msra.mxu1 %v2064_v43 }
 0x15b   : > { %1128 = vmatprep.subr.bf16.mxu0 %v2071_v44  ;;  %1169 = vmatprep.subr.bf16.mxu1 %v2078_v45 }
 0x15e   : > { %1129 = vmatpush1.bf16.msra.mxu0 %v2083_v46  ;;  %1170 = vmatpush1.bf16.msra.mxu1 %v2093_v48 }
 0x15f   : > { %1130 = vmatprep.subr.bf16.mxu0 %v2100_v49  ;;  %1171 = vmatprep.subr.bf16.mxu1 %v2105_v50 }
 0x162   : > { %1131 = vmatpush1.bf16.msra.mxu0 %v2112_v51  ;;  %1172 = vmatpush1.bf16.msra.mxu1 %v2117_v52 }
 0x163   : > { %1132 = vmatprep.subr.bf16.mxu0 %v2124_v53  ;;  %1173 = vmatprep.subr.bf16.mxu1 %v2129_v54 }
 0x166   : > { %1133 = vmatpush1.bf16.msra.mxu0 %v2138_v55  ;;  %1174 = vmatpush1.bf16.msra.mxu1 %v2143_v56 }
 0x167   : > { %1134 = vmatprep.subr.bf16.mxu0 %v2150_v57  ;;  %1175 = vmatprep.subr.bf16.mxu1 %v2155_v58 }
 0x16a   : > { %1135 = vmatpush1.bf16.msra.mxu0 %v2162_v59  ;;  %1176 = vmatpush1.bf16.msra.mxu1 %v2167_v60 }
 0x16b   : > { %1136 = vmatprep.subr.bf16.mxu0 %v2174_v61  ;;  %1177 = vmatprep.subr.bf16.mxu1 %v2179_v62 }
 0x16e   : > { %1137 = vmatpush1.bf16.msra.mxu0 %v2186_v63  ;;  %1178 = vmatpush1.bf16.msra.mxu1 %v2191_v0 }
 0x16f   : > { %1138 = vmatprep.subr.bf16.mxu0 %v2198_v1  ;;  %1179 = vmatprep.subr.bf16.mxu1 %v2203_v2 }
 0x172   : > { %1139 = vmatpush1.bf16.msra.mxu0 %v2210_v3  ;;  %1180 = vmatpush1.bf16.msra.mxu1 %v2215_v5 }
 0x173   : > { %1238 = vmatprep.subr.bf16.mxu0 %v2026_v35  ;;  %1279 = vmatprep.subr.bf16.mxu1 %v2031_v36 }
 0x215   : > { %v1044_v28 = vpop.f32.mrf.mxu0  ;;  %v1085_v31 = vpop.f32.mrf.mxu1 }
 0x216   : > { %v1045_v32 = vadd.f32 %v1044_v28, %v2260_v25  ;;  %v1086_v35 = vadd.f32 %v1085_v31, %v2262_v26 }
 0x217   : > { %v1046_v37 = vpop.f32.mrf.mxu0  ;;  %v1087_v47 = vpop.f32.mrf.mxu1 }
 0x218   : > { %v1551_v8 = vmul.f32 -1.442695, %v1045_v32  ;;  %v1047_v9 = vadd.f32 %v1046_v37, %v2264_v29  ;;  %v1553_v24 = vmul.f32 -1.442695, %v1086_v35  ;;  %v1088_v36 = vadd.f32 %v1087_v47, %v2266_v30  ;;  %v2429_v37 = vld [vmem:[#allocation14_spill] sm:$0xff] }
 0x219   : > { %v1048_v12 = vpop.f32.mrf.mxu0  ;;  %v1089_v13 = vpop.f32.mrf.mxu1 }
 0x21a   : > { %1720 = vpow2.f32 %v1551_v8  ;;  %v1552_v14 = vmul.f32 -1.442695, %v1047_v9  ;;  %v2430_v13 = vld [vmem:[#allocation16_spill] sm:$0xff] }
 0x21b   : > { %v1049_v20 = vpop.f32.mrf.mxu0  ;;  %v1090_v18 = vpop.f32.mrf.mxu1 }
 0x21c   : > { %1722 = vpow2.f32 %v1552_v14 }
 0x21d   : > { %1724 = vpow2.f32 %v1553_v24 }
 0x21e   : > { %1726 = vtanh.f32 %v1088_v36 }
 0x227   : > { %v1721_v34 = vpop.eup %1720 }
 0x228   : > { %v1101_v23 = vadd.f32 1.0, %v1721_v34  ;;  %v2431_v34 = vld [vmem:[#allocation15_spill] sm:$0xff] }
 0x229   : > { %v1723_v25 = vpop.eup %1722 }
 0x22a   : > { %1728 = vrcp.f32 %v1101_v23  ;;  %v1102_v4 = vadd.f32 1.0, %v1723_v25  ;;  %v1725_v29 = vpop.eup %1724 }
 0x22b   : > { %v1727_v7 = vpop.eup %1726  ;;  %v1103_v15 = vadd.f32 1.0, %v1725_v29 }
 0x22c   : > { %1730 = vrcp.f32 %v1102_v4  ;;  %v2432_v4 = vld [vmem:[#allocation17_spill] sm:$0xff] }
 0x22d   : > { %1732 = vrcp.f32 %v1103_v15 }
 0x237   : > { %v1729_v11 = vpop.eup %1728 }
 0x238   : > { %v1112_v10 = vmul.f32 %v1729_v11, %v1727_v7 }
 0x239   : > { %v1731_v27 = vpop.eup %1730 }
 0x23a   : > { %v1111_v19 = vmul.f32 %v1731_v27, %v2284_v17  ;;  %v1733_v30 = vpop.eup %1732 }
 0x23c   : > { %v2326_v26 = vadd.f32 %v1112_v10, %v1111_v19 }
 0x23e   : > { %1734 = vtanh.f32 %v2326_v26 }
 0x24b   : > { %v1735_v21 = vpop.eup %1734 }
 0x24c   : > { %v1115_v16 = vmul.f32 %v1735_v21, %v1733_v30 }
 0x24e   : > { %v1116_v6 = vpack.c.bf16 %v1115_v16, %v1115_v16 }
 0x250   : > { %1157 = vmatmul.mubr.bf16.vlgmr.msra.gmra.mxu0 %v1116_v6  ;;  %1198 = vmatmul.mubr.bf16.vlgmr.msra.gmra.mxu1 %v1116_v6 }
 0x251   : > { %1239 = vmatpush1.bf16.msra.mxu0 %v2037_v38  ;;  %1280 = vmatpush1.bf16.msra.mxu1 %v2042_v39 }
 0x252   : > { %1240 = vmatprep.subr.bf16.mxu0 %v2047_v40  ;;  %1281 = vmatprep.subr.bf16.mxu1 %v2054_v41 }
 0x253   : > { %1270 = vmatprep.mubr.bf16.mxu0 %v2425_v22  ;;  %1311 = vmatprep.mubr.bf16.mxu1 %v2425_v22 }
 0x255   : > { %1241 = vmatpush1.bf16.msra.mxu0 %v2059_v42  ;;  %1282 = vmatpush1.bf16.msra.mxu1 %v2064_v43 }
 0x256   : > { %1242 = vmatprep.subr.bf16.mxu0 %v2071_v44  ;;  %1283 = vmatprep.subr.bf16.mxu1 %v2078_v45  ;;  %v2426_v44 = vld [vmem:[#allocation12_spill] sm:$0xff] }
 0x259   : > { %1243 = vmatpush1.bf16.msra.mxu0 %v2083_v46  ;;  %1284 = vmatpush1.bf16.msra.mxu1 %v2093_v48 }
 0x25a   : > { %1244 = vmatprep.subr.bf16.mxu0 %v2100_v49  ;;  %1285 = vmatprep.subr.bf16.mxu1 %v2105_v50 }
 0x25d   : > { %1245 = vmatpush1.bf16.msra.mxu0 %v2112_v51  ;;  %1286 = vmatpush1.bf16.msra.mxu1 %v2117_v52  ;;  %v2427_v52 = vld [vmem:[#allocation11_spill] sm:$0xff] }
 0x25e   : > { %1246 = vmatprep.subr.bf16.mxu0 %v2124_v53  ;;  %1287 = vmatprep.subr.bf16.mxu1 %v2129_v54 }
 0x261   : > { %1247 = vmatpush1.bf16.msra.mxu0 %v2138_v55  ;;  %1288 = vmatpush1.bf16.msra.mxu1 %v2143_v56  ;;  %v2428_v55 = vld [vmem:[#allocation13_spill] sm:$0xff] }
 0x262   : > { %1248 = vmatprep.subr.bf16.mxu0 %v2150_v57  ;;  %1289 = vmatprep.subr.bf16.mxu1 %v2155_v58 }
 0x265   : > { %1249 = vmatpush1.bf16.msra.mxu0 %v2162_v59  ;;  %1290 = vmatpush1.bf16.msra.mxu1 %v2167_v60 }
 0x266   : > { %1250 = vmatprep.subr.bf16.mxu0 %v2174_v61  ;;  %1291 = vmatprep.subr.bf16.mxu1 %v2179_v62 }
 0x269   : > { %1251 = vmatpush1.bf16.msra.mxu0 %v2186_v63  ;;  %1292 = vmatpush1.bf16.msra.mxu1 %v2191_v0 }
 0x26a   : > { %1252 = vmatprep.subr.bf16.mxu0 %v2198_v1  ;;  %1293 = vmatprep.subr.bf16.mxu1 %v2203_v2 }
 0x26d   : > { %1253 = vmatpush1.bf16.msra.mxu0 %v2210_v3  ;;  %1294 = vmatpush1.bf16.msra.mxu1 %v2215_v5 }
 0x310   : > { %v1158_v38 = vpop.f32.mrf.mxu0  ;;  %v1199_v39 = vpop.f32.mrf.mxu1 }
 0x311   : > { %v1159_v40 = vadd.f32 %v1158_v38, %v2268_v33  ;;  %v1200_v53 = vadd.f32 %v1199_v39, %v2427_v52 }
 0x312   : > { %v1160_v41 = vpop.f32.mrf.mxu0  ;;  %v1201_v42 = vpop.f32.mrf.mxu1 }
 0x313   : > { %v1554_v43 = vmul.f32 -1.442695, %v1159_v40  ;;  %v1161_v45 = vadd.f32 %v1160_v41, %v2426_v44  ;;  %v1556_v54 = vmul.f32 -1.442695, %v1200_v53  ;;  %v1202_v56 = vadd.f32 %v1201_v42, %v2428_v55 }
 0x314   : > { %v1162_v46 = vpop.f32.mrf.mxu0  ;;  %v1203_v48 = vpop.f32.mrf.mxu1 }
 0x315   : > { %1736 = vpow2.f32 %v1554_v43  ;;  %v1555_v49 = vmul.f32 -1.442695, %v1161_v45 }
 0x316   : > { %v1163_v50 = vpop.f32.mrf.mxu0  ;;  %v1204_v51 = vpop.f32.mrf.mxu1 }
 0x317   : > { %1738 = vpow2.f32 %v1555_v49 }
 0x318   : > { %1740 = vpow2.f32 %v1556_v54 }
 0x319   : > { %1742 = vtanh.f32 %v1202_v56 }
 0x322   : > { %v1737_v57 = vpop.eup %1736 }
 0x323   : > { %v1215_v58 = vadd.f32 1.0, %v1737_v57 }
 0x324   : > { %v1739_v59 = vpop.eup %1738 }
 0x325   : > { %1744 = vrcp.f32 %v1215_v58  ;;  %v1216_v60 = vadd.f32 1.0, %v1739_v59  ;;  %v1741_v61 = vpop.eup %1740 }
 0x326   : > { %v1743_v62 = vpop.eup %1742  ;;  %v1217_v2 = vadd.f32 1.0, %v1741_v61 }
 0x327   : > { %1746 = vrcp.f32 %v1216_v60 }
 0x328   : > { %1748 = vrcp.f32 %v1217_v2 }
 0x332   : > { %v1745_v63 = vpop.eup %1744 }
 0x333   : > { %v1226_v0 = vmul.f32 %v1745_v63, %v1743_v62 }
 0x334   : > { %v1747_v1 = vpop.eup %1746 }
 0x335   : > { %v1225_v3 = vmul.f32 %v1747_v1, %v2326_v26  ;;  %v1749_v33 = vpop.eup %1748 }
 0x337   : > { %v1227_v5 = vadd.f32 %v1226_v0, %v1225_v3 }
 0x339   : > { %1750 = vtanh.f32 %v1227_v5 }
 0x346   : > { %v1751_v17 = vpop.eup %1750 }
 0x347   : > { %v1229_v22 = vmul.f32 %v1751_v17, %v1749_v33 }
 0x349   : > { %v1230_v28 = vpack.c.bf16 %v1229_v22, %v1229_v22 }
 0x34b   : > { %1271 = vmatmul.mubr.bf16.vlgmr.msra.gmra.mxu0 %v1230_v28  ;;  %1312 = vmatmul.mubr.bf16.vlgmr.msra.gmra.mxu1 %v1230_v28 }
 0x40b   : > { %v1272_v31 = vpop.f32.mrf.mxu0  ;;  %v1313_v32 = vpop.f32.mrf.mxu1 }
 0x40c   : > { %v1273_v47 = vadd.f32 %v1272_v31, %v2429_v37  ;;  %v1314_v23 = vadd.f32 %v1313_v32, %v2431_v34 }
 0x40d   : > { %v1274_v8 = vpop.f32.mrf.mxu0  ;;  %v1315_v9 = vpop.f32.mrf.mxu1 }
 0x40e   : > { %v1557_v12 = vmul.f32 -1.442695, %v1273_v47  ;;  %v1275_v14 = vadd.f32 %v1274_v8, %v2430_v13  ;;  %v1559_v25 = vmul.f32 -1.442695, %v1314_v23  ;;  %v1316_v29 = vadd.f32 %v1315_v9, %v2432_v4 }
 0x40f   : > { %v1276_v20 = vpop.f32.mrf.mxu0  ;;  %v1317_v18 = vpop.f32.mrf.mxu1 }
 0x410   : > { %1752 = vpow2.f32 %v1557_v12  ;;  %v1558_v35 = vmul.f32 -1.442695, %v1275_v14 }
 0x411   : > { %v1277_v24 = vpop.f32.mrf.mxu0  ;;  %v1318_v36 = vpop.f32.mrf.mxu1 }
 0x412   : > { %1754 = vpow2.f32 %v1558_v35 }
 0x413   : > { %1756 = vpow2.f32 %v1559_v25 }
 0x414   : > { %1758 = vtanh.f32 %v1316_v29 }
 0x41d   : > { %v1753_v7 = vpop.eup %1752 }
 0x41e   : > { %v1329_v11 = vadd.f32 1.0, %v1753_v7 }
 0x41f   : > { %v1755_v10 = vpop.eup %1754 }
 0x420   : > { %1760 = vrcp.f32 %v1329_v11  ;;  %v1330_v27 = vadd.f32 1.0, %v1755_v10  ;;  %v1757_v15 = vpop.eup %1756 }
 0x421   : > { %v1759_v19 = vpop.eup %1758  ;;  %v1331_v16 = vadd.f32 1.0, %v1757_v15 }
 0x422   : > { %1762 = vrcp.f32 %v1330_v27 }
 0x423   : > { %1764 = vrcp.f32 %v1331_v16 }
 0x42d   : > { %v1761_v26 = vpop.eup %1760 }
 0x42e   : > { %v1340_v30 = vmul.f32 %v1761_v26, %v1759_v19 }
 0x42f   : > { %v1763_v21 = vpop.eup %1762 }
 0x430   : > { %v1339_v6 = vmul.f32 %v1763_v21, %v1227_v5  ;;  %v1765_v39 = vpop.eup %1764 }
 0x432   : > { %v1341_v38 = vadd.f32 %v1340_v30, %v1339_v6 }
 0x434   : > { %1766 = vtanh.f32 %v1341_v38  ;;  %1345 = vst [vmem:[#allocation4] sm:$0xff] %v1341_v38 }
 0x440   : > { %1349 = sbr.rel (%p1560_p6) target bundleno = 1094 (0x446), region = 52 }
 0x441   : > { %v1767_v40 = vpop.eup %1766 }
 0x442   : > { %v1343_v41 = vmul.f32 %v1767_v40, %v1765_v39 }
 0x444   : > { %1344 = vst [vmem:[#allocation3] sm:$0xff] %v1343_v41 }
 0x445   : > { %1350 = vst [vmem:[#allocation5] sm:$0xff] %v1343_v41  ;;  %1351 = vst [vmem:[#allocation7] sm:$0xff] %v1341_v38 }
 0x446 PF: > { %p2373_p7 = scmp.eq.s32.totalorder %s1473_s27, 3  ;;  %s1849_s29 = smov [#allocation5]  }
 0x447   : > { %s1361_s30 = sshll.u32 %s1849_s29, 4  ;;  %s1850_s8 = smov [#allocation7]   ;;  %s1362_s30 = int_to_ptr.vmem [resolvable:$true] %s1361_s30 }
 0x448   : > { %s1374_s9 = sshll.u32 %s1850_s8, 4  ;;  %s1768_s11 = scalar_lea.vmem %s1362_s30, 128  ;;  %s1375_s9 = int_to_ptr.vmem [resolvable:$true] %s1374_s9 }
 0x449   : > { %p1769_p8 = scmp.ne.s32.totalorder %s1362_s30, %s1768_s11  ;;  %p1775_p11 = scmp.lt.s32.totalorder %s1362_s30, %s1362_s30 }
 0x44a   : > { %p1776_p12 = scmp.lt.s32.totalorder %s1768_s11, %s1768_s11 }
 0x44b   : > { %p1770_p9 = pnand %p1769_p8, %p2373_p7 }
 0x44c   : > { %p1777_p13 = por %p1776_p12, %p1775_p11 }
 0x44d   : > { %p1771_p10 = pneg %p1770_p9 }
 0x44f   : > { %p1778_p0 = pnand %p1777_p13, %p1771_p10 }
 0x451   : > { %1781 = shalt.err (!%p1778_p0)
}
 0x452   : > { %1568 = dma.vmem_to_hbm [thread:$0]  (%p2373_p7), %s1362_s30, 128, %s2414_s6, [#allocation6]  }
 0x453   : > { %s1792_s12 = scalar_lea.vmem %s1375_s9, 128  ;;  %p1799_p4 = scmp.lt.s32.totalorder %s1375_s9, %s1375_s9 }
 0x454   : > { %p1793_p1 = scmp.ne.s32.totalorder %s1375_s9, %s1792_s12  ;;  %p1800_p5 = scmp.lt.s32.totalorder %s1792_s12, %s1792_s12 }
 0x456   : > { %p1794_p2 = pnand %p1793_p1, %p2373_p7  ;;  %p1801_p6 = por %p1800_p5, %p1799_p4 }
 0x458   : > { %p1795_p3 = pneg %p1794_p2 }
 0x45a   : > { %p1802_p8 = pnand %p1801_p6, %p1795_p3 }
 0x45c   : > { %1805 = shalt.err (!%p1802_p8)
}
 0x45d   : > { %1570 = dma.vmem_to_hbm [thread:$0]  (%p2373_p7), %s1375_s9, 128, %s2415_s7, [#allocation8]  }
 0x45e   : > { %1829 = dma.done.wait (%p2373_p7), [#allocation6], 128  }
 0x45f   : > { %1831 = vsyncadd (%p2373_p7), [#allocation6], 4294967168 }
 0x460   : > { %1833 = dma.done.wait (%p2373_p7), [#allocation8], 128  }
 0x461   : > { %1835 = vsyncadd (%p2373_p7), [#allocation8], 4294967168 }
 0x462 PF: > { %s20_s26 = sadd.s32 1, %s1846_s26   ;;  %s2434_s24 = smov %s1842_s25 }
 0x463   : > { %p17_p9 = scmp.ge.s32.totalorder %s20_s26, 6   ;;  %s2435_s25 = smov %s2437_s28 }
 0x465   :  { %19 = sbr.rel (!%p17_p9) target bundleno = 3 (0x3), region = 99 }
 0x46a   :  { %1391 = vsyncpa [#allocation6], 1 }
 0x46b   :  { %1393 = vsyncpa [#allocation6 + $0x1], 1 }
 0x46c   :  { %1394 = vsyncpa [#allocation8], 1 }

</bundles_post_ra>
